<compile_context>
chip_gen: v7x
topology: tpu7x:2x2x1
jax: 0.10.0
libtpu: 0.0.40
codegen_flags: <defaults>
</compile_context>

<pallas_src>
import functools

import jax
import jax.numpy as jnp
from jax.experimental import pallas as pl
from jax.experimental.pallas import tpu as pltpu


def _histogram_kernel(vec_ref, centers_ref, widths_ref, out_ref, acc_ref,
                      *, num_bins, n_total, tile_n):
    # vec_ref:     (B_blk, TN)        f32, current N tile, N on lanes
    # centers_ref: (K,)               f32 scalars in SMEM
    # widths_ref:  (K,)               f32 scalars in SMEM
    # out_ref:     (1, K, B_blk)      written once, at the last N step
    # acc_ref:     (K, B_blk, TN)     resident f32 accumulator
    n_idx = pl.program_id(1)
    num_n = pl.num_programs(1)

    @pl.when(n_idx == 0)
    def _init():
        acc_ref[...] = jnp.zeros_like(acc_ref)

    v = vec_ref[...]                                     # (B_blk, TN)

    def accumulate(apply_mask):
        if apply_mask:
            col = jax.lax.broadcasted_iota(jnp.int32, v.shape, 1)
            valid = (col + n_idx * tile_n) < n_total     # (B_blk, TN) bool
        else:
            valid = None

        def one_bin(k):
            c = centers_ref[k]                           # SMEM scalar
            w = widths_ref[k]                            # SMEM scalar
            s = jnp.maximum(1.0 - jnp.abs(v - c) * w, 0.0)
            if valid is not None:
                s = jnp.where(valid, s, 0.0)             # NaN-safe tail mask
            acc_ref[k] += s                              # plain vreg adds

        if num_bins <= 32:
            for k in range(num_bins):                    # unrolled (LLO visible)
                one_bin(k)
        else:
            def body(k, carry):
                one_bin(k)
                return carry
            jax.lax.fori_loop(0, num_bins, body, 0)

    if n_total % tile_n != 0:
        # Only the last tile is ragged: full tiles take the mask-free path.
        @pl.when(n_idx < num_n - 1)
        def _full_tiles():
            accumulate(False)

        @pl.when(n_idx == num_n - 1)
        def _ragged_tile():
            accumulate(True)
    else:
        accumulate(False)

    @pl.when(n_idx == num_n - 1)
    def _finalize():
        totals = jnp.sum(acc_ref[...], axis=-1)          # (K, B_blk) lane reduce
        out_ref[...] = totals[None, :, :].astype(out_ref.dtype)


_ACC_BUDGET_BYTES = 4 * 1024 * 1024      # resident (K, B_blk, TN) f32 accumulator


def _choose_tile_n(n, b_blk, k):
    """Largest N tile whose accumulator fits the budget; multiple of 128 unless
    it is the full N (single-tile fast path, no tail mask)."""
    bytes_per_col = k * b_blk * 4
    if n <= 32768 and n * bytes_per_col <= _ACC_BUDGET_BYTES:
        return n
    tn = (_ACC_BUDGET_BYTES // bytes_per_col // 128) * 128
    tn = max(128, min(int(tn), 8192))
    n_ceil = ((n + 127) // 128) * 128
    return min(tn, n_ceil)


def histogram(vec, bin_centers, bin_width, *, tile_n=None):
    """vec: (B, N); bin_centers/bin_width: (K, 1) or (K,).  Returns (B, K) f32."""
    vec = jnp.asarray(vec, jnp.float32)
    B, N = vec.shape
    centers = jnp.asarray(bin_centers, jnp.float32).reshape(-1)
    K = centers.shape[0]
    widths = jnp.broadcast_to(jnp.asarray(bin_width, jnp.float32).reshape(-1), (K,))

    # Batch blocking: pad B to a multiple of 8 when B > 8 so the sublane block
    # stays aligned and the leading "parallel" axis gets >= 2 programs (both
    # v7x TensorCores) for B >= 9.  Small batches use a single full block.
    if B > 8:
        B_blk = 8
        B_pad = ((B + 7) // 8) * 8
    else:
        B_blk = B
        B_pad = B
    num_b = B_pad // B_blk
    if B_pad != B:
        vec = jnp.pad(vec, ((0, B_pad - B), (0, 0)))     # padded rows sliced off

    TN = tile_n if tile_n is not None else _choose_tile_n(N, B_blk, K)
    num_n = pl.cdiv(N, TN)

    # VMEM working set: resident accumulator + double-buffered input block +
    # a handful of fused elementwise temporaries.  Derive the limit from it
    # (v7x has only 64 MiB physical VMEM), with 16 MiB floor / 32 MiB cap.
    acc_bytes = K * B_blk * TN * 4
    vec_blk_bytes = B_blk * TN * 4
    ws = acc_bytes + 8 * vec_blk_bytes + 2 * K * B_blk * 4 + 2 * K * 4
    vmem_limit = int(min(max(16 * 2**20, 2 * ws), 32 * 2**20))

    kernel = functools.partial(_histogram_kernel,
                               num_bins=K, n_total=N, tile_n=TN)

    out3 = pl.pallas_call(
        kernel,
        out_shape=jax.ShapeDtypeStruct((num_b, K, B_blk), jnp.float32),
        grid=(num_b, num_n),
        in_specs=[
            pl.BlockSpec((B_blk, TN), lambda b, n: (b, n)),
            pl.BlockSpec(memory_space=pltpu.MemorySpace.SMEM),   # bin centers
            pl.BlockSpec(memory_space=pltpu.MemorySpace.SMEM),   # bin widths
        ],
        out_specs=pl.BlockSpec((1, K, B_blk), lambda b, n: (b, 0, 0)),
        scratch_shapes=[pltpu.VMEM((K, B_blk, TN), jnp.float32)],
        compiler_params=pltpu.CompilerParams(
            dimension_semantics=("parallel", "arbitrary"),
            vmem_limit_bytes=vmem_limit,
        ),
    )(vec, centers, widths)

    # (num_b, K, B_blk) -> (B, K): tiny transpose, done by XLA in the wrapper.
    return jnp.transpose(out3, (0, 2, 1)).reshape(B_pad, K)[:B]


def _reference(vec, bin_centers, bin_width):
    score = vec[:, None, :] - bin_centers[None, :, :]
    score = 1.0 - jnp.abs(score) * bin_width[None, :, :]
    score = jnp.maximum(score, 0.0)
    return jnp.sum(score, axis=2)


if __name__ == "__main__":
    key = jax.random.PRNGKey(0)
    k1, k2, k3 = jax.random.split(key, 3)

    # ---- Test 1: toy shapes matching the module's typical usage -------------
    B, N, K = 2, 16, 8
    vec = jax.random.normal(k1, (B, N), dtype=jnp.float32)
    bin_centers = jnp.linspace(-1.5, 1.5, K, dtype=jnp.float32).reshape(K, 1)
    spacing = float(bin_centers[1, 0] - bin_centers[0, 0])
    bin_width = jnp.full((K, 1), 1.0 / spacing, dtype=jnp.float32)

    out = histogram(vec, bin_centers, bin_width)
    jax.block_until_ready(out)
    ref = _reference(vec, bin_centers, bin_width)
    assert out.shape == (B, K)
    assert jnp.allclose(out, ref, atol=1e-4, rtol=1e-4)

    # ---- Test 2: larger N, single-tile fast path -----------------------------
    B2, N2, K2 = 4, 2000, 8
    vec2 = jax.random.normal(k2, (B2, N2), dtype=jnp.float32)
    bin_centers2 = jnp.linspace(-2.0, 2.0, K2, dtype=jnp.float32).reshape(K2, 1)
    spacing2 = float(bin_centers2[1, 0] - bin_centers2[0, 0])
    bin_width2 = jnp.full((K2, 1), 1.0 / spacing2, dtype=jnp.float32)

    out2 = histogram(vec2, bin_centers2, bin_width2)
    jax.block_until_ready(out2)
    ref2 = _reference(vec2, bin_centers2, bin_width2)
    assert out2.shape == (B2, K2)
    assert jnp.allclose(out2, ref2, atol=1e-3, rtol=1e-4)

    # ---- Test 3: tiled/masked reduction + padded batch + parallel B axis -----
    B3, N3, K3 = 10, 1000, 8
    vec3 = jax.random.normal(k3, (B3, N3), dtype=jnp.float32)
    bin_centers3 = jnp.linspace(-2.0, 2.0, K3, dtype=jnp.float32).reshape(K3, 1)
    spacing3 = float(bin_centers3[1, 0] - bin_centers3[0, 0])
    bin_width3 = jnp.full((K3, 1), 1.0 / spacing3, dtype=jnp.float32)

    out3 = histogram(vec3, bin_centers3, bin_width3, tile_n=256)  # ragged tail
    jax.block_until_ready(out3)
    ref3 = _reference(vec3, bin_centers3, bin_width3)
    assert out3.shape == (B3, K3)
    assert jnp.allclose(out3, ref3, atol=1e-3, rtol=1e-4)

    print("KERNEL_OK")
</pallas_src>

<mosaic_0001>
module attributes {stable_mosaic.version = 11 : i64} {
  func.func @_histogram_kernel(%arg0: i32, %arg1: i32, %arg2: memref<2x16xf32, #tpu.memory_space<vmem>>, %arg3: memref<8xf32, #tpu.memory_space<smem>>, %arg4: memref<8xf32, #tpu.memory_space<smem>>, %arg5: memref<1x8x2xf32, #tpu.memory_space<vmem>>, %arg6: memref<8x2x16xf32, #tpu.memory_space<vmem>>) attributes {dimension_semantics = [#tpu.dimension_semantics<parallel>, #tpu.dimension_semantics<arbitrary>], iteration_bounds = array<i64: 1, 1>, scalar_prefetch = 0 : i64, scratch_operands = 1 : i64, tpu.core_type = #tpu.core_type<tc>, window_params = [{transform_indices = @transform_0, window_bounds = array<i64: 2, 16>}, {transform_indices = @transform_1, window_bounds = array<i64: 8>}, {transform_indices = @transform_2, window_bounds = array<i64: 8>}, {transform_indices = @transform_3, window_bounds = array<i64: 1, 8, 2>}]} {
    %c0_i32 = arith.constant 0 : i32
    %0 = arith.cmpi eq, %arg1, %c0_i32 : i32
    %1 = arith.extui %0 : i1 to i32
    %c0_i32_0 = arith.constant 0 : i32
    %2 = arith.cmpi ne, %1, %c0_i32_0 : i32
    scf.if %2 {
      %cst_76 = arith.constant 0.000000e+00 : f32
      %143 = vector.broadcast %cst_76 : f32 to vector<8x2x16xf32>
      %c0_77 = arith.constant 0 : index
      %c0_78 = arith.constant 0 : index
      %c0_79 = arith.constant 0 : index
      %144 = vector.load %arg6[%c0_77, %c0_78, %c0_79] : memref<8x2x16xf32, #tpu.memory_space<vmem>>, vector<8x2x16xf32>
      tpu.vector_store %arg6[%c0_77, %c0_78, %c0_79], %143 {strides = array<i32>} : memref<8x2x16xf32, #tpu.memory_space<vmem>>, vector<8x2x16xf32>,
    } else {
    }
    %c0 = arith.constant 0 : index
    %c0_1 = arith.constant 0 : index
    %3 = vector.load %arg2[%c0, %c0_1] : memref<2x16xf32, #tpu.memory_space<vmem>>, vector<2x16xf32>
    %c0_2 = arith.constant 0 : index
    %4 = memref.load %arg3[%c0_2] : memref<8xf32, #tpu.memory_space<smem>>
    %c0_3 = arith.constant 0 : index
    %5 = memref.load %arg4[%c0_3] : memref<8xf32, #tpu.memory_space<smem>>
    %6 = vector.broadcast %4 : f32 to vector<2x16xf32>
    %7 = arith.subf %3, %6 : vector<2x16xf32>
    %8 = math.absf %7 : vector<2x16xf32>
    %9 = vector.broadcast %5 : f32 to vector<2x16xf32>
    %10 = arith.mulf %8, %9 : vector<2x16xf32>
    %cst = arith.constant 1.000000e+00 : f32
    %11 = vector.broadcast %cst : f32 to vector<2x16xf32>
    %12 = arith.subf %11, %10 : vector<2x16xf32>
    %cst_4 = arith.constant 0.000000e+00 : f32
    %13 = vector.broadcast %cst_4 : f32 to vector<2x16xf32>
    %14 = arith.maximumf %12, %13 : vector<2x16xf32>
    %c0_5 = arith.constant 0 : index
    %c0_6 = arith.constant 0 : index
    %c0_7 = arith.constant 0 : index
    %15 = vector.load %arg6[%c0_5, %c0_6, %c0_7] : memref<8x2x16xf32, #tpu.memory_space<vmem>>, vector<1x2x16xf32>
    %16 = vector.shape_cast %15 : vector<1x2x16xf32> to vector<2x16xf32>
    %17 = arith.addf %16, %14 : vector<2x16xf32>
    %c0_8 = arith.constant 0 : index
    %c0_9 = arith.constant 0 : index
    %c0_10 = arith.constant 0 : index
    %18 = vector.load %arg6[%c0_8, %c0_9, %c0_10] : memref<8x2x16xf32, #tpu.memory_space<vmem>>, vector<1x2x16xf32>
    %19 = vector.shape_cast %18 : vector<1x2x16xf32> to vector<2x16xf32>
    %20 = vector.shape_cast %17 : vector<2x16xf32> to vector<1x2x16xf32>
    tpu.vector_store %arg6[%c0_8, %c0_9, %c0_10], %20 {strides = array<i32>} : memref<8x2x16xf32, #tpu.memory_space<vmem>>, vector<1x2x16xf32>,
    %c1 = arith.constant 1 : index
    %21 = memref.load %arg3[%c1] : memref<8xf32, #tpu.memory_space<smem>>
    %c1_11 = arith.constant 1 : index
    %22 = memref.load %arg4[%c1_11] : memref<8xf32, #tpu.memory_space<smem>>
    %23 = vector.broadcast %21 : f32 to vector<2x16xf32>
    %24 = arith.subf %3, %23 : vector<2x16xf32>
    %25 = math.absf %24 : vector<2x16xf32>
    %26 = vector.broadcast %22 : f32 to vector<2x16xf32>
    %27 = arith.mulf %25, %26 : vector<2x16xf32>
    %cst_12 = arith.constant 1.000000e+00 : f32
    %28 = vector.broadcast %cst_12 : f32 to vector<2x16xf32>
    %29 = arith.subf %28, %27 : vector<2x16xf32>
    %cst_13 = arith.constant 0.000000e+00 : f32
    %30 = vector.broadcast %cst_13 : f32 to vector<2x16xf32>
    %31 = arith.maximumf %29, %30 : vector<2x16xf32>
    %c1_14 = arith.constant 1 : index
    %c0_15 = arith.constant 0 : index
    %c0_16 = arith.constant 0 : index
    %32 = vector.load %arg6[%c1_14, %c0_15, %c0_16] : memref<8x2x16xf32, #tpu.memory_space<vmem>>, vector<1x2x16xf32>
    %33 = vector.shape_cast %32 : vector<1x2x16xf32> to vector<2x16xf32>
    %34 = arith.addf %33, %31 : vector<2x16xf32>
    %c1_17 = arith.constant 1 : index
    %c0_18 = arith.constant 0 : index
    %c0_19 = arith.constant 0 : index
    %35 = vector.load %arg6[%c1_17, %c0_18, %c0_19] : memref<8x2x16xf32, #tpu.memory_space<vmem>>, vector<1x2x16xf32>
    %36 = vector.shape_cast %35 : vector<1x2x16xf32> to vector<2x16xf32>
    %37 = vector.shape_cast %34 : vector<2x16xf32> to vector<1x2x16xf32>
    tpu.vector_store %arg6[%c1_17, %c0_18, %c0_19], %37 {strides = array<i32>} : memref<8x2x16xf32, #tpu.memory_space<vmem>>, vector<1x2x16xf32>,
    %c2 = arith.constant 2 : index
    %38 = memref.load %arg3[%c2] : memref<8xf32, #tpu.memory_space<smem>>
    %c2_20 = arith.constant 2 : index
    %39 = memref.load %arg4[%c2_20] : memref<8xf32, #tpu.memory_space<smem>>
    %40 = vector.broadcast %38 : f32 to vector<2x16xf32>
    %41 = arith.subf %3, %40 : vector<2x16xf32>
    %42 = math.absf %41 : vector<2x16xf32>
    %43 = vector.broadcast %39 : f32 to vector<2x16xf32>
    %44 = arith.mulf %42, %43 : vector<2x16xf32>
    %cst_21 = arith.constant 1.000000e+00 : f32
    %45 = vector.broadcast %cst_21 : f32 to vector<2x16xf32>
    %46 = arith.subf %45, %44 : vector<2x16xf32>
    %cst_22 = arith.constant 0.000000e+00 : f32
    %47 = vector.broadcast %cst_22 : f32 to vector<2x16xf32>
    %48 = arith.maximumf %46, %47 : vector<2x16xf32>
    %c2_23 = arith.constant 2 : index
    %c0_24 = arith.constant 0 : index
    %c0_25 = arith.constant 0 : index
    %49 = vector.load %arg6[%c2_23, %c0_24, %c0_25] : memref<8x2x16xf32, #tpu.memory_space<vmem>>, vector<1x2x16xf32>
    %50 = vector.shape_cast %49 : vector<1x2x16xf32> to vector<2x16xf32>
    %51 = arith.addf %50, %48 : vector<2x16xf32>
    %c2_26 = arith.constant 2 : index
    %c0_27 = arith.constant 0 : index
    %c0_28 = arith.constant 0 : index
    %52 = vector.load %arg6[%c2_26, %c0_27, %c0_28] : memref<8x2x16xf32, #tpu.memory_space<vmem>>, vector<1x2x16xf32>
    %53 = vector.shape_cast %52 : vector<1x2x16xf32> to vector<2x16xf32>
    %54 = vector.shape_cast %51 : vector<2x16xf32> to vector<1x2x16xf32>
    tpu.vector_store %arg6[%c2_26, %c0_27, %c0_28], %54 {strides = array<i32>} : memref<8x2x16xf32, #tpu.memory_space<vmem>>, vector<1x2x16xf32>,
    %c3 = arith.constant 3 : index
    %55 = memref.load %arg3[%c3] : memref<8xf32, #tpu.memory_space<smem>>
    %c3_29 = arith.constant 3 : index
    %56 = memref.load %arg4[%c3_29] : memref<8xf32, #tpu.memory_space<smem>>
    %57 = vector.broadcast %55 : f32 to vector<2x16xf32>
    %58 = arith.subf %3, %57 : vector<2x16xf32>
    %59 = math.absf %58 : vector<2x16xf32>
    %60 = vector.broadcast %56 : f32 to vector<2x16xf32>
    %61 = arith.mulf %59, %60 : vector<2x16xf32>
    %cst_30 = arith.constant 1.000000e+00 : f32
    %62 = vector.broadcast %cst_30 : f32 to vector<2x16xf32>
    %63 = arith.subf %62, %61 : vector<2x16xf32>
    %cst_31 = arith.constant 0.000000e+00 : f32
    %64 = vector.broadcast %cst_31 : f32 to vector<2x16xf32>
    %65 = arith.maximumf %63, %64 : vector<2x16xf32>
    %c3_32 = arith.constant 3 : index
    %c0_33 = arith.constant 0 : index
    %c0_34 = arith.constant 0 : index
    %66 = vector.load %arg6[%c3_32, %c0_33, %c0_34] : memref<8x2x16xf32, #tpu.memory_space<vmem>>, vector<1x2x16xf32>
    %67 = vector.shape_cast %66 : vector<1x2x16xf32> to vector<2x16xf32>
    %68 = arith.addf %67, %65 : vector<2x16xf32>
    %c3_35 = arith.constant 3 : index
    %c0_36 = arith.constant 0 : index
    %c0_37 = arith.constant 0 : index
    %69 = vector.load %arg6[%c3_35, %c0_36, %c0_37] : memref<8x2x16xf32, #tpu.memory_space<vmem>>, vector<1x2x16xf32>
    %70 = vector.shape_cast %69 : vector<1x2x16xf32> to vector<2x16xf32>
    %71 = vector.shape_cast %68 : vector<2x16xf32> to vector<1x2x16xf32>
    tpu.vector_store %arg6[%c3_35, %c0_36, %c0_37], %71 {strides = array<i32>} : memref<8x2x16xf32, #tpu.memory_space<vmem>>, vector<1x2x16xf32>,
    %c4 = arith.constant 4 : index
    %72 = memref.load %arg3[%c4] : memref<8xf32, #tpu.memory_space<smem>>
    %c4_38 = arith.constant 4 : index
    %73 = memref.load %arg4[%c4_38] : memref<8xf32, #tpu.memory_space<smem>>
    %74 = vector.broadcast %72 : f32 to vector<2x16xf32>
    %75 = arith.subf %3, %74 : vector<2x16xf32>
    %76 = math.absf %75 : vector<2x16xf32>
    %77 = vector.broadcast %73 : f32 to vector<2x16xf32>
    %78 = arith.mulf %76, %77 : vector<2x16xf32>
    %cst_39 = arith.constant 1.000000e+00 : f32
    %79 = vector.broadcast %cst_39 : f32 to vector<2x16xf32>
    %80 = arith.subf %79, %78 : vector<2x16xf32>
    %cst_40 = arith.constant 0.000000e+00 : f32
    %81 = vector.broadcast %cst_40 : f32 to vector<2x16xf32>
    %82 = arith.maximumf %80, %81 : vector<2x16xf32>
    %c4_41 = arith.constant 4 : index
    %c0_42 = arith.constant 0 : index
    %c0_43 = arith.constant 0 : index
    %83 = vector.load %arg6[%c4_41, %c0_42, %c0_43] : memref<8x2x16xf32, #tpu.memory_space<vmem>>, vector<1x2x16xf32>
    %84 = vector.shape_cast %83 : vector<1x2x16xf32> to vector<2x16xf32>
    %85 = arith.addf %84, %82 : vector<2x16xf32>
    %c4_44 = arith.constant 4 : index
    %c0_45 = arith.constant 0 : index
    %c0_46 = arith.constant 0 : index
    %86 = vector.load %arg6[%c4_44, %c0_45, %c0_46] : memref<8x2x16xf32, #tpu.memory_space<vmem>>, vector<1x2x16xf32>
    %87 = vector.shape_cast %86 : vector<1x2x16xf32> to vector<2x16xf32>
    %88 = vector.shape_cast %85 : vector<2x16xf32> to vector<1x2x16xf32>
    tpu.vector_store %arg6[%c4_44, %c0_45, %c0_46], %88 {strides = array<i32>} : memref<8x2x16xf32, #tpu.memory_space<vmem>>, vector<1x2x16xf32>,
    %c5 = arith.constant 5 : index
    %89 = memref.load %arg3[%c5] : memref<8xf32, #tpu.memory_space<smem>>
    %c5_47 = arith.constant 5 : index
    %90 = memref.load %arg4[%c5_47] : memref<8xf32, #tpu.memory_space<smem>>
    %91 = vector.broadcast %89 : f32 to vector<2x16xf32>
    %92 = arith.subf %3, %91 : vector<2x16xf32>
    %93 = math.absf %92 : vector<2x16xf32>
    %94 = vector.broadcast %90 : f32 to vector<2x16xf32>
    %95 = arith.mulf %93, %94 : vector<2x16xf32>
    %cst_48 = arith.constant 1.000000e+00 : f32
    %96 = vector.broadcast %cst_48 : f32 to vector<2x16xf32>
    %97 = arith.subf %96, %95 : vector<2x16xf32>
    %cst_49 = arith.constant 0.000000e+00 : f32
    %98 = vector.broadcast %cst_49 : f32 to vector<2x16xf32>
    %99 = arith.maximumf %97, %98 : vector<2x16xf32>
    %c5_50 = arith.constant 5 : index
    %c0_51 = arith.constant 0 : index
    %c0_52 = arith.constant 0 : index
    %100 = vector.load %arg6[%c5_50, %c0_51, %c0_52] : memref<8x2x16xf32, #tpu.memory_space<vmem>>, vector<1x2x16xf32>
    %101 = vector.shape_cast %100 : vector<1x2x16xf32> to vector<2x16xf32>
    %102 = arith.addf %101, %99 : vector<2x16xf32>
    %c5_53 = arith.constant 5 : index
    %c0_54 = arith.constant 0 : index
    %c0_55 = arith.constant 0 : index
    %103 = vector.load %arg6[%c5_53, %c0_54, %c0_55] : memref<8x2x16xf32, #tpu.memory_space<vmem>>, vector<1x2x16xf32>
    %104 = vector.shape_cast %103 : vector<1x2x16xf32> to vector<2x16xf32>
    %105 = vector.shape_cast %102 : vector<2x16xf32> to vector<1x2x16xf32>
    tpu.vector_store %arg6[%c5_53, %c0_54, %c0_55], %105 {strides = array<i32>} : memref<8x2x16xf32, #tpu.memory_space<vmem>>, vector<1x2x16xf32>,
    %c6 = arith.constant 6 : index
    %106 = memref.load %arg3[%c6] : memref<8xf32, #tpu.memory_space<smem>>
    %c6_56 = arith.constant 6 : index
    %107 = memref.load %arg4[%c6_56] : memref<8xf32, #tpu.memory_space<smem>>
    %108 = vector.broadcast %106 : f32 to vector<2x16xf32>
    %109 = arith.subf %3, %108 : vector<2x16xf32>
    %110 = math.absf %109 : vector<2x16xf32>
    %111 = vector.broadcast %107 : f32 to vector<2x16xf32>
    %112 = arith.mulf %110, %111 : vector<2x16xf32>
    %cst_57 = arith.constant 1.000000e+00 : f32
    %113 = vector.broadcast %cst_57 : f32 to vector<2x16xf32>
    %114 = arith.subf %113, %112 : vector<2x16xf32>
    %cst_58 = arith.constant 0.000000e+00 : f32
    %115 = vector.broadcast %cst_58 : f32 to vector<2x16xf32>
    %116 = arith.maximumf %114, %115 : vector<2x16xf32>
    %c6_59 = arith.constant 6 : index
    %c0_60 = arith.constant 0 : index
    %c0_61 = arith.constant 0 : index
    %117 = vector.load %arg6[%c6_59, %c0_60, %c0_61] : memref<8x2x16xf32, #tpu.memory_space<vmem>>, vector<1x2x16xf32>
    %118 = vector.shape_cast %117 : vector<1x2x16xf32> to vector<2x16xf32>
    %119 = arith.addf %118, %116 : vector<2x16xf32>
    %c6_62 = arith.constant 6 : index
    %c0_63 = arith.constant 0 : index
    %c0_64 = arith.constant 0 : index
    %120 = vector.load %arg6[%c6_62, %c0_63, %c0_64] : memref<8x2x16xf32, #tpu.memory_space<vmem>>, vector<1x2x16xf32>
    %121 = vector.shape_cast %120 : vector<1x2x16xf32> to vector<2x16xf32>
    %122 = vector.shape_cast %119 : vector<2x16xf32> to vector<1x2x16xf32>
    tpu.vector_store %arg6[%c6_62, %c0_63, %c0_64], %122 {strides = array<i32>} : memref<8x2x16xf32, #tpu.memory_space<vmem>>, vector<1x2x16xf32>,
    %c7 = arith.constant 7 : index
    %123 = memref.load %arg3[%c7] : memref<8xf32, #tpu.memory_space<smem>>
    %c7_65 = arith.constant 7 : index
    %124 = memref.load %arg4[%c7_65] : memref<8xf32, #tpu.memory_space<smem>>
    %125 = vector.broadcast %123 : f32 to vector<2x16xf32>
    %126 = arith.subf %3, %125 : vector<2x16xf32>
    %127 = math.absf %126 : vector<2x16xf32>
    %128 = vector.broadcast %124 : f32 to vector<2x16xf32>
    %129 = arith.mulf %127, %128 : vector<2x16xf32>
    %cst_66 = arith.constant 1.000000e+00 : f32
    %130 = vector.broadcast %cst_66 : f32 to vector<2x16xf32>
    %131 = arith.subf %130, %129 : vector<2x16xf32>
    %cst_67 = arith.constant 0.000000e+00 : f32
    %132 = vector.broadcast %cst_67 : f32 to vector<2x16xf32>
    %133 = arith.maximumf %131, %132 : vector<2x16xf32>
    %c7_68 = arith.constant 7 : index
    %c0_69 = arith.constant 0 : index
    %c0_70 = arith.constant 0 : index
    %134 = vector.load %arg6[%c7_68, %c0_69, %c0_70] : memref<8x2x16xf32, #tpu.memory_space<vmem>>, vector<1x2x16xf32>
    %135 = vector.shape_cast %134 : vector<1x2x16xf32> to vector<2x16xf32>
    %136 = arith.addf %135, %133 : vector<2x16xf32>
    %c7_71 = arith.constant 7 : index
    %c0_72 = arith.constant 0 : index
    %c0_73 = arith.constant 0 : index
    %137 = vector.load %arg6[%c7_71, %c0_72, %c0_73] : memref<8x2x16xf32, #tpu.memory_space<vmem>>, vector<1x2x16xf32>
    %138 = vector.shape_cast %137 : vector<1x2x16xf32> to vector<2x16xf32>
    %139 = vector.shape_cast %136 : vector<2x16xf32> to vector<1x2x16xf32>
    tpu.vector_store %arg6[%c7_71, %c0_72, %c0_73], %139 {strides = array<i32>} : memref<8x2x16xf32, #tpu.memory_space<vmem>>, vector<1x2x16xf32>,
    %c0_i32_74 = arith.constant 0 : i32
    %140 = arith.cmpi eq, %arg1, %c0_i32_74 : i32
    %141 = arith.extui %140 : i1 to i32
    %c0_i32_75 = arith.constant 0 : i32
    %142 = arith.cmpi ne, %141, %c0_i32_75 : i32
    scf.if %142 {
      %c0_76 = arith.constant 0 : index
      %c0_77 = arith.constant 0 : index
      %c0_78 = arith.constant 0 : index
      %143 = vector.load %arg6[%c0_76, %c0_77, %c0_78] : memref<8x2x16xf32, #tpu.memory_space<vmem>>, vector<8x2x16xf32>
      %cst_79 = arith.constant dense<0.000000e+00> : vector<8x2xf32>
      %144 = vector.multi_reduction <add>, %143, %cst_79 [2] : vector<8x2x16xf32> to vector<8x2xf32>
      %145 = vector.shape_cast %144 : vector<8x2xf32> to vector<1x8x2xf32>
      %c0_80 = arith.constant 0 : index
      %c0_81 = arith.constant 0 : index
      %c0_82 = arith.constant 0 : index
      %146 = vector.load %arg5[%c0_80, %c0_81, %c0_82] : memref<1x8x2xf32, #tpu.memory_space<vmem>>, vector<1x8x2xf32>
      tpu.vector_store %arg5[%c0_80, %c0_81, %c0_82], %145 {strides = array<i32>} : memref<1x8x2xf32, #tpu.memory_space<vmem>>, vector<1x8x2xf32>,
    } else {
    }
    return
  }
  func.func @transform_0(%arg0: i32, %arg1: i32) -> (i32, i32) {
    %c0_i32 = arith.constant 0 : i32
    return %arg0, %arg1 : i32, i32
  }
  func.func @transform_1(%arg0: i32, %arg1: i32) -> i32 {
    %c0_i32 = arith.constant 0 : i32
    %c0_i32_0 = arith.constant 0 : i32
    return %c0_i32 : i32
  }
  func.func @transform_2(%arg0: i32, %arg1: i32) -> i32 {
    %c0_i32 = arith.constant 0 : i32
    %c0_i32_0 = arith.constant 0 : i32
    return %c0_i32 : i32
  }
  func.func @transform_3(%arg0: i32, %arg1: i32) -> (i32, i32, i32) {
    %c0_i32 = arith.constant 0 : i32
    %c0_i32_0 = arith.constant 0 : i32
    %c0_i32_1 = arith.constant 0 : i32
    return %arg0, %c0_i32, %c0_i32_0 : i32, i32, i32
  }
}

</mosaic_0001>

<bundles_post_ra>
// kernel: tpu_custom_call.1
= control target key start
LH: loop header
LB: loop body
LE: loop exit
PB: predicated region body
PF: predicated region fallthrough
CT: control target
= control target key end

     0   :  { %8 = vsyncpa [#allocation4], 0  ;;  %s442_s0 = inlined_call_operand.hbm [shape: f32[2,16], index: 0, kind: input, shape index: {}]   ;;  %s443_s1 = inlined_call_operand.vmem [shape: f32[8], index: 1, kind: input, shape index: {}]   ;;  %s444_s2 = inlined_call_operand.vmem [shape: f32[8], index: 2, kind: input, shape index: {}]   ;;  %s445_s3 = inlined_call_operand.vmem [shape: f32[1,8,2], index: 3, kind: output, shape index: {}]  }
   0x1   :  { %9 = vsyncpa [#allocation5], 0  ;;  %s27_s14 = sshll.u32 %s443_s1, 4  ;;  %s28_s14 = int_to_ptr.vmem [resolvable:$true] %s27_s14 }
   0x2   :  { %10 = vsyncpa [#allocation8], 0  ;;  %s340_s15 = smov [#allocation3]   ;;  %s288_s19 = scalar_lea.hbm %s442_s0, 32 }
   0x3   :  { %s17_s16 = sshll.u32 %s340_s15, 4  ;;  %p289_p0 = scmp.ne.s32.totalorder %s442_s0, %s288_s19  ;;  %s18_s16 = int_to_ptr.vmem [resolvable:$true] %s17_s16 }
   0x4   :  { %p292_p1 = scmp.lt.u32.totalorder %s288_s19, %s442_s0 }
   0x6   :  { %p294_p2 = pnand %p292_p1, %p289_p0 }
   0x8   :  { %297 = shalt.err (!%p294_p2)
}
   0x9   :  { %s298_s1 = scalar_lea.vmem %s18_s16, 32  ;;  %p303_p4 = scmp.lt.s32.totalorder %s18_s16, %s18_s16 }
   0xa   :  { %p299_p3 = scmp.ne.s32.totalorder %s18_s16, %s298_s1  ;;  %p304_p5 = scmp.lt.s32.totalorder %s298_s1, %s298_s1 }
   0xc   :  { %p305_p6 = por %p304_p5, %p303_p4 }
   0xe   :  { %p306_p7 = pnand %p305_p6, %p299_p3 }
  0x10   :  { %309 = shalt.err (!%p306_p7)
}
  0x11   :  { %20 = dma.hbm_to_vmem [thread:$0]  %s442_s0, 32, %s18_s16, [#allocation4]  }
  0x12   :  { %s310_s26 = scalar_lea.vmem %s28_s14, 16  ;;  %p315_p9 = scmp.lt.s32.totalorder %s28_s14, %s28_s14 }
  0x13   :  { %p311_p8 = scmp.ne.s32.totalorder %s28_s14, %s310_s26  ;;  %p316_p10 = scmp.lt.s32.totalorder %s310_s26, %s310_s26 }
  0x15   :  { %p317_p11 = por %p316_p10, %p315_p9 }
  0x17   :  { %p318_p12 = pnand %p317_p11, %p311_p8 }
  0x19   :  { %321 = shalt.err (!%p318_p12)
}
  0x1a   :  { %s341_s27 = smov [#allocation6]   ;;  %s37_s30 = sshll.u32 %s444_s2, 4  ;;  %s38_s30 = int_to_ptr.vmem [resolvable:$true] %s37_s30 }
  0x1b   :  { %30 = dma.vmem_to_smem %s28_s14, 16, %s341_s27, [#allocation5]  }
  0x1c   :  { %s322_s4 = scalar_lea.vmem %s38_s30, 16  ;;  %p327_p0 = scmp.lt.s32.totalorder %s38_s30, %s38_s30 }
  0x1d   :  { %p323_p13 = scmp.ne.s32.totalorder %s38_s30, %s322_s4  ;;  %p328_p1 = scmp.lt.s32.totalorder %s322_s4, %s322_s4 }
  0x1f   :  { %p329_p2 = por %p328_p1, %p327_p0 }
  0x21   :  { %p330_p3 = pnand %p329_p2, %p323_p13 }
  0x23   :  { %333 = shalt.err (!%p330_p3)
}
  0x24   :  { %s342_s0 = smov [#allocation7]  }
  0x25   :  { %40 = dma.vmem_to_smem %s38_s30, 16, %s342_s0, [#allocation8]  }
  0x26   :  { %334 = dma.done.wait [#allocation4], 32  }
  0x27   :  { %335 = vsyncadd [#allocation4], 4294967264 }
  0x28   :  { %336 = dma.done.wait [#allocation5], 16  }
  0x29   :  { %337 = vsyncadd [#allocation5], 4294967280 }
  0x2a   :  { %338 = dma.done.wait [#allocation8], 16  }
  0x2b   :  { %339 = vsyncadd [#allocation8], 4294967280 }
  0x2c   :  { %50 = sfence }
  0x2d   :  { %vm55_vm0 = vcmask 123904   ;;  %s65_s5 = sld [smem:[#allocation6]]  ;;  %v343_v0 = vmov 0.0   ;;  %s272_s6 = sld [smem:[#allocation6 + $0x2]]  ;;  %v64_v1 = vld [vmem:[#allocation3] sm:$0x3] }
  0x2e   :  { %56 = vst.msk [vmem:[#allocation2] sm:$0x3] %vm55_vm0, %v343_v0  ;;  %s383_s2 = sld [smem:[#allocation7]]  ;;  %57 = vst.msk [vmem:[#allocation2 + $0x2] sm:$0x3] %vm55_vm0, %v343_v0  ;;  %s392_s7 = sld [smem:[#allocation7 + $0x2]] }
  0x2f   :  { %58 = vst.msk [vmem:[#allocation2 + $0x4] sm:$0x3] %vm55_vm0, %v343_v0  ;;  %59 = vst.msk [vmem:[#allocation2 + $0x6] sm:$0x3] %vm55_vm0, %v343_v0  ;;  %s270_s8 = sld [smem:[#allocation6 + $0x1]]  ;;  %s274_s10 = sld [smem:[#allocation6 + $0x3]] }
  0x30   :  { %60 = vst.msk [vmem:[#allocation2 + $0x8] sm:$0x3] %vm55_vm0, %v343_v0  ;;  %61 = vst.msk [vmem:[#allocation2 + $0xa] sm:$0x3] %vm55_vm0, %v343_v0  ;;  %s394_s9 = sld [smem:[#allocation7 + $0x1]]  ;;  %s396_s11 = sld [smem:[#allocation7 + $0x3]] }
  0x31   :  { %62 = vst.msk [vmem:[#allocation2 + $0xc] sm:$0x3] %vm55_vm0, %v343_v0  ;;  %63 = vst.msk [vmem:[#allocation2 + $0xe] sm:$0x3] %vm55_vm0, %v343_v0  ;;  %s276_s12 = sld [smem:[#allocation6 + $0x4]]  ;;  %s400_s14 = sld [smem:[#allocation6 + $0x5]] }
  0x32   :  { %s398_s13 = sld [smem:[#allocation7 + $0x4]]  ;;  %s402_s15 = sld [smem:[#allocation7 + $0x5]]  ;;  %vm246_vm1 = vcmask 1041409   ;;  %vm248_vm2 = vcmask 1042434   ;;  %vm250_vm3 = vcmask 1043459   ;;  %vm252_vm4 = vcmask 1044484  }
  0x33   :  { %v67_v2 = vstv %s65_s5  ;;  %s404_s16 = sld [smem:[#allocation6 + $0x6]]  ;;  %v93_v4 = vstv %s272_s6  ;;  %s410_s18 = sld [smem:[#allocation6 + $0x7]]  ;;  %vm254_vm5 = vcmask 1045509   ;;  %vm256_vm6 = vcmask 1046534  }
  0x34   :  { %v68_v3 = vsub.f32 %v64_v1, %v67_v2  ;;  %s406_s17 = sld [smem:[#allocation7 + $0x6]]  ;;  %v70_v5 = vstv %s383_s2  ;;  %v94_v6 = vsub.f32 %v64_v1, %v93_v4  ;;  %v96_v7 = vstv %s392_s7  ;;  %s415_s19 = sld [smem:[#allocation7 + $0x7]] }
  0x35   :  { %v80_v8 = vstv %s270_s8  ;;  %v106_v12 = vstv %s274_s10  ;;  %v74_v29 = vld [vmem:[#allocation2] sm:$0x3]  ;;  %v88_v40 = vld [vmem:[#allocation2 + $0x2] sm:$0x3]  ;;  %vm258_vm7 = vcmask 1047559   ;;  %vm261_vm8 = vcmask 15360  }
  0x36   :  { %v69_v9 = vand.u32 2147483647, %v68_v3  ;;  %v81_v10 = vsub.f32 %v64_v1, %v80_v8  ;;  %v83_v11 = vstv %s394_s9  ;;  %v95_v13 = vand.u32 2147483647, %v94_v6  ;;  %v101_v35 = vld [vmem:[#allocation2 + $0x4] sm:$0x3] }
  0x37   :  { %v107_v14 = vsub.f32 %v64_v1, %v106_v12  ;;  %v109_v15 = vstv %s396_s11  ;;  %v119_v16 = vstv %s276_s12  ;;  %v132_v23 = vstv %s400_s14  ;;  %v114_v46 = vld [vmem:[#allocation2 + $0x6] sm:$0x3]  ;;  %v127_v51 = vld [vmem:[#allocation2 + $0x8] sm:$0x3]  ;;  %v140_v59 = vld [vmem:[#allocation2 + $0xa] sm:$0x3] }
  0x38   :  { %v71_v17 = vmul.f32 %v70_v5, %v69_v9  ;;  %v82_v18 = vand.u32 2147483647, %v81_v10  ;;  %v120_v19 = vsub.f32 %v64_v1, %v119_v16  ;;  %v122_v20 = vstv %s398_s13  ;;  %v153_v3 = vld [vmem:[#allocation2 + $0xc] sm:$0x3]  ;;  %v166_v6 = vld [vmem:[#allocation2 + $0xe] sm:$0x3] }
  0x39   :  { %v97_v21 = vmul.f32 %v96_v7, %v95_v13  ;;  %v108_v22 = vand.u32 2147483647, %v107_v14  ;;  %v135_v24 = vstv %s402_s15  ;;  %v133_v28 = vsub.f32 %v64_v1, %v132_v23 }
  0x3a   :  { %v72_v25 = vsub.f32 1.0, %v71_v17  ;;  %v84_v26 = vmul.f32 %v83_v11, %v82_v18  ;;  %v121_v27 = vand.u32 2147483647, %v120_v19  ;;  %v145_v32 = vstv %s404_s16 }
  0x3b   :  { %v98_v30 = vsub.f32 1.0, %v97_v21  ;;  %v110_v31 = vmul.f32 %v109_v15, %v108_v22  ;;  %v148_v33 = vstv %s406_s17  ;;  %v134_v38 = vand.u32 2147483647, %v133_v28 }
  0x3c   :  { %v73_v34 = vmax.f32 %v72_v25, 0.0  ;;  %v85_v36 = vsub.f32 1.0, %v84_v26  ;;  %v123_v37 = vmul.f32 %v122_v20, %v121_v27  ;;  %v146_v42 = vsub.f32 %v64_v1, %v145_v32 }
  0x3d   :  { %v99_v39 = vmax.f32 %v98_v30, 0.0  ;;  %v111_v41 = vsub.f32 1.0, %v110_v31  ;;  %v158_v43 = vstv %s410_s18  ;;  %v136_v48 = vmul.f32 %v135_v24, %v134_v38 }
  0x3e   :  { %v75_v44 = vadd.f32 %v74_v29, %v73_v34  ;;  %v86_v45 = vmax.f32 %v85_v36, 0.0  ;;  %v124_v47 = vsub.f32 1.0, %v123_v37  ;;  %v147_v52 = vand.u32 2147483647, %v146_v42 }
  0x3f   :  { %v102_v49 = vadd.f32 %v101_v35, %v99_v39  ;;  %v112_v50 = vmax.f32 %v111_v41, 0.0  ;;  %v159_v53 = vsub.f32 %v64_v1, %v158_v43  ;;  %v137_v56 = vsub.f32 1.0, %v136_v48 }
  0x40   :  { %77 = vst.msk [vmem:[#allocation2] sm:$0x3] %vm55_vm0, %v75_v44  ;;  %v89_v54 = vadd.f32 %v88_v40, %v86_v45  ;;  %v125_v55 = vmax.f32 %v124_v47, 0.0  ;;  %v161_v57 = vstv %s415_s19  ;;  %v149_v60 = vmul.f32 %v148_v33, %v147_v52 }
  0x41   :  { %103 = vst.msk [vmem:[#allocation2 + $0x4] sm:$0x3] %vm55_vm0, %v102_v49  ;;  %v115_v58 = vadd.f32 %v114_v46, %v112_v50  ;;  %v160_v61 = vand.u32 2147483647, %v159_v53  ;;  %v138_v63 = vmax.f32 %v137_v56, 0.0  ;;  %v212_v26 = vlaneseq }
  0x42   :  { %90 = vst.msk [vmem:[#allocation2 + $0x2] sm:$0x3] %vm55_vm0, %v89_v54  ;;  %v128_v62 = vadd.f32 %v127_v51, %v125_v55  ;;  %v150_v0 = vsub.f32 1.0, %v149_v60 }
  0x43   :  { %116 = vst.msk [vmem:[#allocation2 + $0x6] sm:$0x3] %vm55_vm0, %v115_v58  ;;  %v162_v1 = vmul.f32 %v161_v57, %v160_v61  ;;  %v141_v2 = vadd.f32 %v140_v59, %v138_v63  ;;  %v213_v27 = vand.u32 127, %v212_v26  ;;  %v215_v28 = vshrl.u32 %v212_v26, 7 }
  0x44   :  { %129 = vst.msk [vmem:[#allocation2 + $0x8] sm:$0x3] %vm55_vm0, %v128_v62  ;;  %v151_v4 = vmax.f32 %v150_v0, 0.0 }
  0x45   :  { %v163_v5 = vsub.f32 1.0, %v162_v1  ;;  %142 = vst.msk [vmem:[#allocation2 + $0xa] sm:$0x3] %vm55_vm0, %v141_v2  ;;  %v216_v30 = vsub.s32 %v213_v27, %v215_v28 }
  0x46   :  { %v154_v8 = vadd.f32 %v153_v3, %v151_v4 }
  0x47   :  { %v172_v7 = vld [vmem:[#allocation2] sm:$0x3]  ;;  %v164_v9 = vmax.f32 %v163_v5, 0.0 }
  0x48   :  { %v180_v10 = vsel %vm55_vm0, %v172_v7, 0.0  ;;  %v174_v11 = vld [vmem:[#allocation2 + $0x4] sm:$0x3]  ;;  %155 = vst.msk [vmem:[#allocation2 + $0xc] sm:$0x3] %vm55_vm0, %v154_v8 }
  0x49   :  { %181 = vadd.xlane.f32.xlu0 %v180_v10  ;;  %v186_v12 = vsel %vm55_vm0, %v174_v11, 0.0  ;;  %v173_v13 = vld [vmem:[#allocation2 + $0x2] sm:$0x3]  ;;  %v167_v14 = vadd.f32 %v166_v6, %v164_v9 }
  0x4a   :  { %187 = vadd.xlane.f32.xlu1 %v186_v12  ;;  %v183_v15 = vsel %vm55_vm0, %v173_v13, 0.0  ;;  %v175_v16 = vld [vmem:[#allocation2 + $0x6] sm:$0x3] }
  0x4b   :  { %v189_v17 = vsel %vm55_vm0, %v175_v16, 0.0  ;;  %v176_v18 = vld [vmem:[#allocation2 + $0x8] sm:$0x3]  ;;  %168 = vst.msk [vmem:[#allocation2 + $0xe] sm:$0x3] %vm55_vm0, %v167_v14 }
  0x4c   :  { %v177_v19 = vld [vmem:[#allocation2 + $0xa] sm:$0x3]  ;;  %v192_v20 = vsel %vm55_vm0, %v176_v18, 0.0 }
  0x4d   :  { %184 = vadd.xlane.f32.xlu0 %v183_v15  ;;  %v195_v21 = vsel %vm55_vm0, %v177_v19, 0.0 }
  0x4e   :  { %190 = vadd.xlane.f32.xlu1 %v189_v17 }
  0x4f   :  { %v178_v22 = vld [vmem:[#allocation2 + $0xc] sm:$0x3] }
  0x50   :  { %v198_v23 = vsel %vm55_vm0, %v178_v22, 0.0 }
  0x51   :  { %193 = vadd.xlane.f32.xlu0 %v192_v20 }
  0x52   :  { %196 = vadd.xlane.f32.xlu1 %v195_v21  ;;  %v179_v24 = vld [vmem:[#allocation2 + $0xe] sm:$0x3] }
  0x53   :  { %v201_v25 = vsel %vm55_vm0, %v179_v24, 0.0 }
  0x55   :  { %199 = vadd.xlane.f32.xlu0 %v198_v23 }
  0x56   :  { %202 = vadd.xlane.f32.xlu1 %v201_v25 }
  0xd6   :  { %v182_v29 = vpop.xlane.xlu0 %181 }
  0xd7   :  { %v188_v31 = vpop.xlane.xlu1 %187  ;;  %v217_v33 = vrot.slane %v182_v29, %v216_v30 }
  0xd8   :  { %v225_v36 = vrot.slane %v188_v31, %v216_v30 }
  0xda   :  { %v185_v32 = vpop.xlane.xlu0 %184 }
  0xdb   :  { %v221_v34 = vrot.slane %v185_v32, %v216_v30  ;;  %v191_v35 = vpop.xlane.xlu1 %190 }
  0xdc   :  { %v229_v37 = vrot.slane %v191_v35, %v216_v30 }
  0xdd   :  { %v247_v38 = vsel %vm246_vm1, %v221_v34, %v217_v33 }
  0xde   :  { %v249_v39 = vsel %vm248_vm2, %v225_v36, %v247_v38  ;;  %v194_v40 = vpop.xlane.xlu0 %193 }
  0xdf   :  { %v251_v41 = vsel %vm250_vm3, %v229_v37, %v249_v39  ;;  %v233_v42 = vrot.slane %v194_v40, %v216_v30  ;;  %v197_v43 = vpop.xlane.xlu1 %196 }
  0xe0   :  { %v237_v44 = vrot.slane %v197_v43, %v216_v30 }
  0xe1   :  { %v253_v45 = vsel %vm252_vm4, %v233_v42, %v251_v41 }
  0xe2   :  { %v200_v46 = vpop.xlane.xlu0 %199  ;;  %v255_v49 = vsel %vm254_vm5, %v237_v44, %v253_v45 }
  0xe3   :  { %v241_v47 = vrot.slane %v200_v46, %v216_v30  ;;  %v203_v48 = vpop.xlane.xlu1 %202 }
  0xe4   :  { %v245_v50 = vrot.slane %v203_v48, %v216_v30 }
  0xe5   :  { %v257_v51 = vsel %vm256_vm6, %v241_v47, %v255_v49 }
  0xe6   :  { %v259_v52 = vsel %vm258_vm7, %v245_v50, %v257_v51 }
  0xe7   :  { %262 = vst.msk [vmem:[%s445_s3] sm:$0xff] %vm261_vm8, %v259_v52 }
  0xe8   :  { %267 = vsyncpa [#allocation4], 1 }
  0xe9   :  { %268 = vsyncpa [#allocation5], 1 }
  0xea   :  { %269 = vsyncpa [#allocation8], 1 }

</bundles_post_ra>
